<compile_context>
chip_gen: v7x
topology: tpu7x:2x2x1
jax: 0.10.0
libtpu: 0.0.40
codegen_flags: <defaults>
</compile_context>

<pallas_src>
import functools

import jax
import jax.numpy as jnp
from jax.experimental import pallas as pl
from jax.experimental.pallas import tpu as pltpu

_C_IN = 32
_C_MID = 32
_C_OUT = 10

# Per-grid-step working-set target.  Conservative enough for v5e (16 MiB scoped
# default / 128 MiB physical), v6e (32/128) and v7x (32/64) once we raise the
# scoped limit explicitly below.
_VMEM_BUDGET = 24 * 1024 * 1024
_VMEM_LIMIT_FLOOR = 40 * 1024 * 1024


def _conv1x1_mlp_kernel(x_ref, w1_ref, b1_ref, w2_ref, b2_ref, w3_ref, b3_ref,
                        o_ref):
    # x block: (TB, 32, T); lanes = spatial (dense).  Weights are tiny, so the
    # bf16 casts are hoisted once per grid step.
    w1 = w1_ref[...].astype(jnp.bfloat16)
    w2 = w2_ref[...].astype(jnp.bfloat16)
    w3 = w3_ref[...].astype(jnp.bfloat16)
    b1 = b1_ref[...]
    b2 = b2_ref[...]
    b3 = b3_ref[...]

    def one_image(xb):
        # bf16 MXU operands, f32 accumulation.
        x = xb.astype(jnp.bfloat16)                                    # (32, T)
        h1 = jnp.dot(w1, x, preferred_element_type=jnp.float32) + b1
        h1 = jnp.maximum(h1, 0.01 * h1)                                # LeakyReLU(0.01)
        h2 = jnp.dot(w2, h1.astype(jnp.bfloat16),
                     preferred_element_type=jnp.float32) + b2
        h2 = jnp.maximum(h2, 0.01 * h2)                                # LeakyReLU(0.01)
        out = jnp.dot(w3, h2.astype(jnp.bfloat16),
                      preferred_element_type=jnp.float32) + b3
        return out.astype(o_ref.dtype)                                 # (10, T)

    tb = x_ref.shape[0]
    # TB is a small static power of two; a fully unrolled per-image loop keeps
    # every op visible to the scheduler (equivalent to fori_loop(unroll=True)).
    for b in range(tb):
        o_ref[b] = one_image(x_ref[b])


def _vmem_bytes(tb, t):
    """Rough per-step VMEM use: double-buffered x+out blocks + per-image temps."""
    io = 2 * tb * (_C_IN + _C_OUT) * t * 4        # pipelined x + out blocks (f32)
    inter = 512 * t                               # h1/h2 f32 + bf16 temps (per-b)
    return io + inter + (1 << 16)                 # + weights / slack


def _vmem_limit(tb, t):
    need = _vmem_bytes(tb, t)
    return int(min(max(_VMEM_LIT if False else _VMEM_LIMIT_FLOOR, need + (8 << 20)),
                   100 * 1024 * 1024))


def _choose_tiles(batch, hw):
    """Pick (batch_tile, spatial_tile) that divide (B, HW) exactly.

    Spatial tile: lane-dense (multiple of 128) and as large as the VMEM budget
    allows; irregular HW falls back to one full-width block (legal: a block dim
    equal to the full array dim is exempt from the (8,128) rule).
    Batch tile: grows until the budget is hit, while keeping >=2 total grid
    steps when possible so megacore (v7x: 2 TCs) can still shard the work.
    """
    if hw % 128 == 0:
        limit = hw if batch > 1 else max(128, hw // 2)   # batch-1: leave >=2 steps
        hw_tile = 128
        for cand in (32768, 16384, 8192, 4096, 2048, 1024, 512, 256, 128):
            if cand <= limit and hw % cand == 0 and _vmem_bytes(1, cand) <= _VMEM_BUDGET:
                hw_tile = cand
                break
    else:
        hw_tile = hw

    n_spatial = hw // hw_tile
    tb = 1
    for cand in (32, 16, 8, 4, 2):
        if (batch % cand == 0
                and _vmem_bytes(cand, hw_tile) <= _VMEM_BUDGET
                and (batch // cand) * n_spatial >= 2):
            tb = cand
            break
    return tb, hw_tile


@functools.partial(jax.jit, static_argnames=("tb", "hw_tile"))
def _run_mlp(x3, w1, b1, w2, b2, w3, b3, *, tb, hw_tile):
    B, c_in, HW = x3.shape
    c_out = w3.shape[0]
    grid = (B // tb, HW // hw_tile)

    return pl.pallas_call(
        _conv1x1_mlp_kernel,
        out_shape=jax.ShapeDtypeStruct((B, c_out, HW), jnp.float32),
        grid_spec=pltpu.PrefetchScalarGridSpec(
            num_scalar_prefetch=0,
            grid=grid,
            in_specs=[
                pl.BlockSpec((tb, c_in, hw_tile), lambda i, j: (i, 0, j)),  # x
                pl.BlockSpec((_C_MID, c_in), lambda i, j: (0, 0)),          # W1
                pl.BlockSpec((_C_MID, 1), lambda i, j: (0, 0)),             # b1
                pl.BlockSpec((_C_MID, _C_MID), lambda i, j: (0, 0)),        # W2
                pl.BlockSpec((_C_MID, 1), lambda i, j: (0, 0)),             # b2
                pl.BlockSpec((c_out, _C_MID), lambda i, j: (0, 0)),         # W3
                pl.BlockSpec((c_out, 1), lambda i, j: (0, 0)),              # b3
            ],
            out_specs=pl.BlockSpec((tb, c_out, hw_tile), lambda i, j: (i, 0, j)),
        ),
        compiler_params=pltpu.CompilerParams(
            dimension_semantics=("parallel", "parallel"),
            vmem_limit_bytes=_vmem_limit(tb, hw_tile)),
    )(x3, w1, b1, w2, b2, w3, b3)


def discriminator_for_difference(x_nchw, params):
    """Forward pass. x_nchw: (B, 32, H, W) float32. Returns (B, 10*H*W)."""
    w1, b1, w2, b2, w3, b3 = params
    B, C, H, W = x_nchw.shape
    assert C == _C_IN
    HW = H * W

    # NCHW -> (B, 32, H*W): a free reshape, no HBM transpose on input.
    x3 = x_nchw.reshape(B, C, HW)

    tb, hw_tile = _choose_tiles(B, HW)
    out3 = _run_mlp(x3, w1, b1, w2, b2, w3, b3, tb=tb, hw_tile=hw_tile)  # (B,10,HW)

    # (B, 10, HW) is already channel-major == PyTorch's out.view(B, -1).
    return out3.reshape(B, -1)


def init_params(key):
    """Deterministic init matching the Conv2d layer shapes (kernel_size=1).

    PyTorch Conv2d weight is (C_out, C_in, 1, 1); we keep it as (C_out, C_in)
    (squeezed, NOT transposed) so the kernel computes W @ x over channel rows.
    Biases are stored as (C_out, 1) to broadcast over the spatial lane axis.
    """
    def conv1x1(k, c_in, c_out):
        kw, kb = jax.random.split(k)
        bound = 1.0 / jnp.sqrt(c_in)
        w = jax.random.uniform(kw, (c_out, c_in), jnp.float32, -bound, bound)
        b = jax.random.uniform(kb, (c_out, 1), jnp.float32, -bound, bound)
        return w, b

    k1, k2, k3 = jax.random.split(key, 3)
    w1, b1 = conv1x1(k1, _C_IN, _C_MID)
    w2, b2 = conv1x1(k2, _C_MID, _C_MID)
    w3, b3 = conv1x1(k3, _C_MID, _C_OUT)
    return (w1, b1, w2, b2, w3, b3)


def _reference(x_nchw, params):
    """Pure-JAX reference with the same bf16-operand / f32-accumulate numerics."""
    w1, b1, w2, b2, w3, b3 = params
    B, C, H, W = x_nchw.shape
    x = x_nchw.reshape(B, C, H * W)

    def lin(w, b, h):
        return jnp.einsum("oc,bch->boh", w.astype(jnp.bfloat16),
                          h.astype(jnp.bfloat16),
                          preferred_element_type=jnp.float32) + b[None]

    h = lin(w1, b1, x)
    h = jnp.maximum(h, 0.01 * h)
    h = lin(w2, b2, h)
    h = jnp.maximum(h, 0.01 * h)
    o = lin(w3, b3, h)
    return o.reshape(B, -1)


if __name__ == "__main__":
    key = jax.random.PRNGKey(0)
    kx, kp = jax.random.split(key)
    params = init_params(kp)

    # Small inputs consistent with the module (in-channels fixed at 32 by Conv2d).
    # Shapes exercise: full-width irregular HW, batch tiling (TB>1), and a
    # lane-dense 128-multiple HW.
    test_shapes = [(2, 32, 4, 4), (8, 32, 4, 4), (2, 32, 16, 16)]
    for i, shape in enumerate(test_shapes):
        x = jax.random.normal(jax.random.fold_in(kx, i), shape, dtype=jnp.float32)
        out = jax.block_until_ready(discriminator_for_difference(x, params))
        ref = _reference(x, params)
        assert out.shape == (shape[0], 10 * shape[2] * shape[3]), out.shape
        assert jnp.allclose(out, ref, atol=2e-3, rtol=2e-3), f"mismatch for {shape}"

    print("KERNEL_OK")
</pallas_src>

<mosaic_0001>
module attributes {stable_mosaic.version = 11 : i64} {
  func.func @_conv1x1_mlp_kernel(%arg0: i32, %arg1: i32, %arg2: memref<1x32x16xf32, #tpu.memory_space<vmem>>, %arg3: memref<32x32xf32, #tpu.memory_space<vmem>>, %arg4: memref<32x1xf32, #tpu.memory_space<vmem>>, %arg5: memref<32x32xf32, #tpu.memory_space<vmem>>, %arg6: memref<32x1xf32, #tpu.memory_space<vmem>>, %arg7: memref<10x32xf32, #tpu.memory_space<vmem>>, %arg8: memref<10x1xf32, #tpu.memory_space<vmem>>, %arg9: memref<1x10x16xf32, #tpu.memory_space<vmem>>) attributes {dimension_semantics = [#tpu.dimension_semantics<parallel>, #tpu.dimension_semantics<parallel>], iteration_bounds = array<i64: 2, 1>, scalar_prefetch = 0 : i64, scratch_operands = 0 : i64, tpu.core_type = #tpu.core_type<tc>, window_params = [{transform_indices = @transform_0, window_bounds = array<i64: 1, 32, 16>}, {pipeline_mode = #tpu.pipeline_mode<synchronous>, transform_indices = @transform_1, window_bounds = array<i64: 32, 32>}, {pipeline_mode = #tpu.pipeline_mode<synchronous>, transform_indices = @transform_2, window_bounds = array<i64: 32, 1>}, {pipeline_mode = #tpu.pipeline_mode<synchronous>, transform_indices = @transform_3, window_bounds = array<i64: 32, 32>}, {pipeline_mode = #tpu.pipeline_mode<synchronous>, transform_indices = @transform_4, window_bounds = array<i64: 32, 1>}, {pipeline_mode = #tpu.pipeline_mode<synchronous>, transform_indices = @transform_5, window_bounds = array<i64: 10, 32>}, {pipeline_mode = #tpu.pipeline_mode<synchronous>, transform_indices = @transform_6, window_bounds = array<i64: 10, 1>}, {transform_indices = @transform_7, window_bounds = array<i64: 1, 10, 16>}]} {
    %c0 = arith.constant 0 : index
    %c0_0 = arith.constant 0 : index
    %0 = vector.load %arg3[%c0, %c0_0] : memref<32x32xf32, #tpu.memory_space<vmem>>, vector<32x32xf32>
    %1 = arith.truncf %0 : vector<32x32xf32> to vector<32x32xbf16>
    %c0_1 = arith.constant 0 : index
    %c0_2 = arith.constant 0 : index
    %2 = vector.load %arg5[%c0_1, %c0_2] : memref<32x32xf32, #tpu.memory_space<vmem>>, vector<32x32xf32>
    %3 = arith.truncf %2 : vector<32x32xf32> to vector<32x32xbf16>
    %c0_3 = arith.constant 0 : index
    %c0_4 = arith.constant 0 : index
    %4 = vector.load %arg7[%c0_3, %c0_4] : memref<10x32xf32, #tpu.memory_space<vmem>>, vector<10x32xf32>
    %5 = arith.truncf %4 : vector<10x32xf32> to vector<10x32xbf16>
    %c0_5 = arith.constant 0 : index
    %c0_6 = arith.constant 0 : index
    %6 = vector.load %arg4[%c0_5, %c0_6] : memref<32x1xf32, #tpu.memory_space<vmem>>, vector<32x1xf32>
    %c0_7 = arith.constant 0 : index
    %c0_8 = arith.constant 0 : index
    %7 = vector.load %arg6[%c0_7, %c0_8] : memref<32x1xf32, #tpu.memory_space<vmem>>, vector<32x1xf32>
    %c0_9 = arith.constant 0 : index
    %c0_10 = arith.constant 0 : index
    %8 = vector.load %arg8[%c0_9, %c0_10] : memref<10x1xf32, #tpu.memory_space<vmem>>, vector<10x1xf32>
    %c0_11 = arith.constant 0 : index
    %c0_12 = arith.constant 0 : index
    %c0_13 = arith.constant 0 : index
    %9 = vector.load %arg2[%c0_11, %c0_12, %c0_13] : memref<1x32x16xf32, #tpu.memory_space<vmem>>, vector<1x32x16xf32>
    %10 = vector.shape_cast %9 : vector<1x32x16xf32> to vector<32x16xf32>
    %11 = arith.truncf %10 : vector<32x16xf32> to vector<32x16xbf16>
    %cst = arith.constant dense<0.000000e+00> : vector<32x16xf32>
    %12 = tpu.matmul %1, %11, %cst {dimension_numbers = #tpu.dot_dimension_numbers<[1], [0], [0], [1], [0, 0, 1, 1], [], []>} : vector<32x32xbf16>, vector<32x16xbf16>, vector<32x16xf32> -> vector<32x16xf32>
    %13 = vector.broadcast %6 : vector<32x1xf32> to vector<32x16xf32>
    %14 = arith.addf %12, %13 : vector<32x16xf32>
    %cst_14 = arith.constant 0.00999999977 : f32
    %15 = vector.broadcast %cst_14 : f32 to vector<32x16xf32>
    %16 = arith.mulf %15, %14 : vector<32x16xf32>
    %17 = arith.maximumf %14, %16 : vector<32x16xf32>
    %18 = arith.truncf %17 : vector<32x16xf32> to vector<32x16xbf16>
    %cst_15 = arith.constant dense<0.000000e+00> : vector<32x16xf32>
    %19 = tpu.matmul %3, %18, %cst_15 {dimension_numbers = #tpu.dot_dimension_numbers<[1], [0], [0], [1], [0, 0, 1, 1], [], []>} : vector<32x32xbf16>, vector<32x16xbf16>, vector<32x16xf32> -> vector<32x16xf32>
    %20 = vector.broadcast %7 : vector<32x1xf32> to vector<32x16xf32>
    %21 = arith.addf %19, %20 : vector<32x16xf32>
    %cst_16 = arith.constant 0.00999999977 : f32
    %22 = vector.broadcast %cst_16 : f32 to vector<32x16xf32>
    %23 = arith.mulf %22, %21 : vector<32x16xf32>
    %24 = arith.maximumf %21, %23 : vector<32x16xf32>
    %25 = arith.truncf %24 : vector<32x16xf32> to vector<32x16xbf16>
    %cst_17 = arith.constant dense<0.000000e+00> : vector<10x16xf32>
    %26 = tpu.matmul %5, %25, %cst_17 {dimension_numbers = #tpu.dot_dimension_numbers<[1], [0], [0], [1], [0, 0, 1, 1], [], []>} : vector<10x32xbf16>, vector<32x16xbf16>, vector<10x16xf32> -> vector<10x16xf32>
    %27 = vector.broadcast %8 : vector<10x1xf32> to vector<10x16xf32>
    %28 = arith.addf %26, %27 : vector<10x16xf32>
    %c0_18 = arith.constant 0 : index
    %c0_19 = arith.constant 0 : index
    %c0_20 = arith.constant 0 : index
    %29 = vector.load %arg9[%c0_18, %c0_19, %c0_20] : memref<1x10x16xf32, #tpu.memory_space<vmem>>, vector<1x10x16xf32>
    %30 = vector.shape_cast %29 : vector<1x10x16xf32> to vector<10x16xf32>
    %31 = vector.shape_cast %28 : vector<10x16xf32> to vector<1x10x16xf32>
    tpu.vector_store %arg9[%c0_18, %c0_19, %c0_20], %31 {strides = array<i32>} : memref<1x10x16xf32, #tpu.memory_space<vmem>>, vector<1x10x16xf32>,
    return
  }
  func.func @transform_0(%arg0: i32, %arg1: i32) -> (i32, i32, i32) {
    %c0_i32 = arith.constant 0 : i32
    %c0_i32_0 = arith.constant 0 : i32
    return %arg0, %c0_i32, %arg1 : i32, i32, i32
  }
  func.func @transform_1(%arg0: i32, %arg1: i32) -> (i32, i32) {
    %c0_i32 = arith.constant 0 : i32
    %c0_i32_0 = arith.constant 0 : i32
    %c0_i32_1 = arith.constant 0 : i32
    return %c0_i32, %c0_i32_0 : i32, i32
  }
  func.func @transform_2(%arg0: i32, %arg1: i32) -> (i32, i32) {
    %c0_i32 = arith.constant 0 : i32
    %c0_i32_0 = arith.constant 0 : i32
    %c0_i32_1 = arith.constant 0 : i32
    return %c0_i32, %c0_i32_0 : i32, i32
  }
  func.func @transform_3(%arg0: i32, %arg1: i32) -> (i32, i32) {
    %c0_i32 = arith.constant 0 : i32
    %c0_i32_0 = arith.constant 0 : i32
    %c0_i32_1 = arith.constant 0 : i32
    return %c0_i32, %c0_i32_0 : i32, i32
  }
  func.func @transform_4(%arg0: i32, %arg1: i32) -> (i32, i32) {
    %c0_i32 = arith.constant 0 : i32
    %c0_i32_0 = arith.constant 0 : i32
    %c0_i32_1 = arith.constant 0 : i32
    return %c0_i32, %c0_i32_0 : i32, i32
  }
  func.func @transform_5(%arg0: i32, %arg1: i32) -> (i32, i32) {
    %c0_i32 = arith.constant 0 : i32
    %c0_i32_0 = arith.constant 0 : i32
    %c0_i32_1 = arith.constant 0 : i32
    return %c0_i32, %c0_i32_0 : i32, i32
  }
  func.func @transform_6(%arg0: i32, %arg1: i32) -> (i32, i32) {
    %c0_i32 = arith.constant 0 : i32
    %c0_i32_0 = arith.constant 0 : i32
    %c0_i32_1 = arith.constant 0 : i32
    return %c0_i32, %c0_i32_0 : i32, i32
  }
  func.func @transform_7(%arg0: i32, %arg1: i32) -> (i32, i32, i32) {
    %c0_i32 = arith.constant 0 : i32
    %c0_i32_0 = arith.constant 0 : i32
    return %arg0, %c0_i32, %arg1 : i32, i32, i32
  }
}

</mosaic_0001>

<bundles_post_ra>
// kernel: _run_mlp.1
= control target key start
LH: loop header
LB: loop body
LE: loop exit
PB: predicated region body
PF: predicated region fallthrough
CT: control target
= control target key end

     0   :  { %s803_s24 = smov 0   ;;  %s805_s25 = smov 0   ;;  %s905_s0 = inlined_call_operand.vmem [shape: f32[2,32,16], index: 0, kind: input, shape index: {}]   ;;  %s906_s1 = inlined_call_operand.vmem [shape: f32[32,32], index: 1, kind: input, shape index: {}]   ;;  %s907_s2 = inlined_call_operand.vmem [shape: f32[32,1], index: 2, kind: input, shape index: {}]   ;;  %s908_s3 = inlined_call_operand.vmem [shape: f32[32,32], index: 3, kind: input, shape index: {}]   ;;  %s909_s4 = inlined_call_operand.vmem [shape: f32[32,1], index: 4, kind: input, shape index: {}]   ;;  %s910_s5 = inlined_call_operand.vmem [shape: f32[10,32], index: 5, kind: input, shape index: {}]   ;;  %s911_s6 = inlined_call_operand.vmem [shape: f32[10,1], index: 6, kind: input, shape index: {}]   ;;  %s912_s7 = inlined_call_operand.vmem [shape: f32[2,10,16], index: 7, kind: output, shape index: {}]  }
   0x1   :  { %s807_s26 = smov 0  }
   0x2 LB: > { %s29_s27 = sadd.s32 1, %s754_s25  ;;  %p658_p0 = scmp.ge.s32.totalorder %s758_s26, 1  ;;  %s758_s26 = sphi %s807_s26, %s17_s26   ;;  %s754_s25 = sphi %s805_s25, %s914_s25   ;;  %s750_s24 = sphi %s803_s24, %s913_s24  }
   0x3   : > { %p31_p1 = scmp.ge.s32.totalorder %s29_s27, 2  ;;  %p256_p2 = scmp.lt.s32.totalorder %s758_s26, 3 }
   0x5   : > { %s916_s27 = smov (%p31_p1, %s29_s27), 0  ;;  %p257_p3 = pnand %p658_p0, %p256_p2 }
   0x6   : > { %p294_p4 = scmp.lt.s32.totalorder (!%p257_p3), %s750_s24, 1  ;;  %v311_v0 = vld [vmem:[%s906_s1] sm:$0xff] (!%p257_p3)  ;;  %v312_v1 = vld [vmem:[%s906_s1 + $0x8] sm:$0xff] (!%p257_p3)  ;;  %vm362_vm0 = vcmask (!%p257_p3), 261120   ;;  %v760_v3 = vmov (!%p257_p3), 0   ;;  %v328_v5 = vld [vmem:[%s907_s2 + $0x10] sm:$0xff] (!%p257_p3) }
   0x7   : > { %260 = sbr.rel (%p257_p3) target bundleno = 706 (0x2c2), region = 48  ;;  %v315_v2 = vpack.c.bf16 (!%p257_p3), %v312_v1, %v311_v0  ;;  %734 = vset.pattern.permute.xlu0 (!%p257_p3), %v760_v3  ;;  %v326_v4 = vld [vmem:[%s907_s2] sm:$0xff] (!%p257_p3)  ;;  %735 = vset.pattern.permute.xlu1 (!%p257_p3), %v760_v3  ;;  %v327_v6 = vld [vmem:[%s907_s2 + $0x8] sm:$0xff] (!%p257_p3)  ;;  %v329_v7 = vld [vmem:[%s907_s2 + $0x18] sm:$0xff] (!%p257_p3)  ;;  %v761_v51 = vmov (!%p257_p3), 0.0   ;;  %vm762_vm1 = vmmov (!%p257_p3), 0  }
   0x8   : > { %344 = vperm.xlu0 (!%p257_p3), %734, %v326_v4   ;;  %354 = vperm.xlu1 (!%p257_p3), %735, %v328_v5   ;;  %v330_v13 = vld [vmem:[%s909_s4] sm:$0xff] (!%p257_p3)  ;;  %v331_v15 = vld [vmem:[%s909_s4 + $0x8] sm:$0xff] (!%p257_p3)  ;;  %v313_v16 = vld [vmem:[%s906_s1 + $0x10] sm:$0xff] (!%p257_p3)  ;;  %vm567_vm2 = vcmask (!%p257_p3), 130048   ;;  %vm569_vm3 = vcmask (!%p257_p3), 123904  }
   0x9   : > { %687 = vmatprep.mubr.msk.bf16.mxu0 (!%p257_p3), %vm362_vm0, %v315_v2  ;;  %v314_v17 = vld [vmem:[%s906_s1 + $0x18] sm:$0xff] (!%p257_p3)  ;;  %v332_v18 = vld [vmem:[%s909_s4 + $0x10] sm:$0xff] (!%p257_p3)  ;;  %v334_v21 = vld [vmem:[%s911_s6] sm:$0xff] (!%p257_p3) }
   0xa   : > { %v333_v19 = vld [vmem:[%s909_s4 + $0x18] sm:$0xff] (!%p257_p3)  ;;  %v316_v20 = vpack.c.bf16 (!%p257_p3), %v314_v17, %v313_v16  ;;  %v335_v22 = vld [vmem:[%s911_s6 + $0x8] sm:$0x3] (!%p257_p3)  ;;  %v317_v23 = vld [vmem:[%s908_s3] sm:$0xff] (!%p257_p3) }
   0xb   : > { %v318_v24 = vld [vmem:[%s908_s3 + $0x8] sm:$0xff] (!%p257_p3)  ;;  %v319_v48 = vld [vmem:[%s908_s3 + $0x10] sm:$0xff] (!%p257_p3)  ;;  %v320_v49 = vld [vmem:[%s908_s3 + $0x18] sm:$0xff] (!%p257_p3) }
   0xc   : > { %349 = vperm.xlu0 (!%p257_p3), %734, %v327_v6   ;;  %359 = vperm.xlu1 (!%p257_p3), %735, %v329_v7   ;;  %v321_v25 = vpack.c.bf16 (!%p257_p3), %v318_v24, %v317_v23  ;;  %v322_v50 = vpack.c.bf16 (!%p257_p3), %v320_v49, %v319_v48 }
   0xe   : > { %s918_s24 = smov (!%p294_p4, %s750_s24), 1  ;;  %695 = vmatprep.mubr.msk.bf16.mxu1 %vm362_vm0, %v321_v25 }
   0xf   : > { %s670_s17 = sshll.u32 %s918_s24, 5  ;;  %s671_s11 = sshll.u32 %s918_s24, 4 }
  0x10   : > { %s301_s20 = scalar_lea.vmem %s905_s0, %s670_s17  ;;  %430 = vperm.xlu0 %734, %v330_v13   ;;  %435 = vperm.xlu1 %735, %v331_v15   ;;  %s309_s14 = scalar_lea.vmem %s912_s7, %s671_s11 }
  0x11   : > { %v336_v8 = vld [vmem:[%s301_s20] sm:$0xff]  ;;  %v337_v9 = vld [vmem:[%s301_s20 + $0x8] sm:$0xff]  ;;  %v338_v10 = vld [vmem:[%s301_s20 + $0x10] sm:$0xff] }
  0x12   : > { %v340_v11 = vpack.c.bf16 %v337_v9, %v336_v8  ;;  %v339_v12 = vld [vmem:[%s301_s20 + $0x18] sm:$0xff] }
  0x13   : > { %v341_v14 = vpack.c.bf16 %v339_v12, %v338_v10  ;;  %v323_v10 = vld [vmem:[%s910_s5] sm:$0xff] }
  0x14   : > { %683 = vmatprep.subr.bf16.mxu0 %v340_v11  ;;  %440 = vperm.xlu0 %734, %v332_v18  }
  0x15   : > { %684 = vmatpush3.bf16.msra.mxu0 %v340_v11  ;;  %445 = vperm.xlu1 %735, %v333_v19   ;;  %v324_v11 = vld [vmem:[%s910_s5 + $0x8] sm:$0x3] }
  0x16   : > { %685 = vmatprep.subr.bf16.mxu0 %v341_v14  ;;  %v325_v12 = vpack.c.bf16 %v324_v11, %v323_v10 }
  0x18   : > { %515 = vperm.xlu0 %734, %v334_v21  }
  0x19   : > { %686 = vmatpush3.bf16.msra.mxu0 %v341_v14  ;;  %520 = vperm.xlu1 %735, %v335_v22  }
  0x1a   : > { %699 = vmatprep.subr.bf16.mxu0 %v761_v51 }
  0x1c   : > { %688 = vmatmul.mubr.msk.bf16.vlgmr.msra.gmra.mrb[0].mxu0 %vm362_vm0, %v316_v20 }
  0x1d   : > { %703 = vmatprep.mubr.msk.bf16.mxu0 %vm762_vm1, %v761_v51 }
  0x87   : > { %v355_v26 = vpop.permute.xlu1 %354  ;;  %v345_v27 = vpop.permute.xlu0 %344 }
  0x8b   : > { %v360_v31 = vpop.permute.xlu1 %359  ;;  %v350_v34 = vpop.permute.xlu0 %349 }
  0x8f   : > { %v431_v52 = vpop.permute.xlu0 %430  ;;  %v436_v53 = vpop.permute.xlu1 %435 }
  0x93   : > { %v441_v54 = vpop.permute.xlu0 %440 }
  0x94   : > { %v446_v58 = vpop.permute.xlu1 %445 }
  0x97   : > { %v516_v13 = vpop.permute.xlu0 %515 }
  0x98   : > { %v521_v17 = vpop.permute.xlu1 %520 }
  0xef   : > { %v689_v28 = vpop.f32.mrb[0].mxu0 }
  0xf0   : > { %v412_v29 = vadd.f32 %v689_v28, %v355_v26  ;;  %v403_v30 = vpop.f32.mrb[1].mxu0 }
  0xf1   : > { %v404_v32 = vadd.f32 %v403_v30, %v345_v27  ;;  %v690_v33 = vpop.f32.mrb[2].mxu0 }
  0xf2   : > { %v420_v35 = vmul.f32 0.01, %v412_v29  ;;  %v415_v36 = vadd.f32 %v690_v33, %v360_v31  ;;  %v406_v37 = vpop.f32.mrb[3].mxu0 }
  0xf3   : > { %v418_v38 = vmul.f32 0.01, %v404_v32  ;;  %v407_v39 = vadd.f32 %v406_v37, %v350_v34 }
  0xf4   : > { %v421_v40 = vmul.f32 0.01, %v415_v36  ;;  %v424_v42 = vmax.f32 %v412_v29, %v420_v35 }
  0xf5   : > { %v419_v41 = vmul.f32 0.01, %v407_v39  ;;  %v422_v44 = vmax.f32 %v404_v32, %v418_v38 }
  0xf6   : > { %v425_v43 = vmax.f32 %v415_v36, %v421_v40 }
  0xf7   : > { %v423_v45 = vmax.f32 %v407_v39, %v419_v41 }
  0xf8   : > { %v427_v46 = vpack.c.bf16 %v425_v43, %v424_v42 }
  0xf9   : > { %v426_v47 = vpack.c.bf16 %v423_v45, %v422_v44 }
  0xfb   : > { %691 = vmatprep.subr.bf16.mxu1 %v426_v47 }
  0xfc   : > { %692 = vmatpush3.bf16.msra.mxu1 %v426_v47 }
  0xfd   : > { %693 = vmatprep.subr.bf16.mxu1 %v427_v46 }
 0x100   : > { %694 = vmatpush3.bf16.msra.mxu1 %v427_v46 }
 0x103   : > { %696 = vmatmul.mubr.msk.bf16.vlgmr.msra.gmra.mrb[0].mxu1 %vm362_vm0, %v322_v50 }
 0x1d6   : > { %v697_v55 = vpop.f32.mrb[0].mxu1 }
 0x1d7   : > { %v497_v56 = vadd.f32 %v697_v55, %v441_v54  ;;  %v488_v57 = vpop.f32.mrb[1].mxu1 }
 0x1d8   : > { %v489_v59 = vadd.f32 %v488_v57, %v431_v52  ;;  %v698_v60 = vpop.f32.mrb[2].mxu1 }
 0x1d9   : > { %v505_v61 = vmul.f32 0.01, %v497_v56  ;;  %v500_v62 = vadd.f32 %v698_v60, %v446_v58  ;;  %v491_v63 = vpop.f32.mrb[3].mxu1 }
 0x1da   : > { %v503_v0 = vmul.f32 0.01, %v489_v59  ;;  %v492_v1 = vadd.f32 %v491_v63, %v436_v53 }
 0x1db   : > { %v506_v2 = vmul.f32 0.01, %v500_v62  ;;  %v509_v4 = vmax.f32 %v497_v56, %v505_v61 }
 0x1dc   : > { %v504_v3 = vmul.f32 0.01, %v492_v1  ;;  %v507_v6 = vmax.f32 %v489_v59, %v503_v0 }
 0x1dd   : > { %v510_v5 = vmax.f32 %v500_v62, %v506_v2 }
 0x1de   : > { %v508_v7 = vmax.f32 %v492_v1, %v504_v3 }
 0x1df   : > { %v512_v8 = vpack.c.bf16 %v510_v5, %v509_v4 }
 0x1e0   : > { %v511_v9 = vpack.c.bf16 %v508_v7, %v507_v6 }
 0x1e2   : > { %700 = vmatpush3.bf16.msra.mxu0 %v511_v9 }
 0x1e3   : > { %701 = vmatprep.subr.bf16.mxu0 %v761_v51 }
 0x1e6   : > { %702 = vmatpush3.bf16.msra.mxu0 %v512_v8 }
 0x1e9   : > { %704 = vmatmul.mubr.msk.bf16.vlgmr.msra.gmra.mrb[4].mxu0 %vm362_vm0, %v325_v12 }
 0x2bc   : > { %v560_v14 = vpop.f32.mrb[4].mxu0 }
 0x2bd   : > { %v561_v15 = vadd.f32 %v560_v14, %v516_v13  ;;  %v705_v16 = vpop.f32.mrb[5].mxu0 }
 0x2be   : > { %v563_v18 = vpop.f32.mrb[6].mxu0 }
 0x2bf   : > { %568 = vst.msk [vmem:[%s309_s14] sm:$0xff] %vm567_vm2, %v561_v15  ;;  %v564_v19 = vadd.f32 %v563_v18, %v521_v17  ;;  %v706_v20 = vpop.f32.mrb[7].mxu0 }
 0x2c1   : > { %570 = vst.msk [vmem:[%s309_s14 + $0x8] sm:$0x3] %vm569_vm3, %v564_v19 }
 0x2c2 PF: > { %s17_s26 = sadd.s32 1, %s758_s26   ;;  %s913_s24 = smov %s754_s25 }
 0x2c3   : > { %p14_p5 = scmp.ge.s32.totalorder %s17_s26, 4   ;;  %s914_s25 = smov %s916_s27 }
 0x2c5   :  { %16 = sbr.rel (!%p14_p5) target bundleno = 2 (0x2), region = 78 }

</bundles_post_ra>
